<compile_context>
chip_gen: v7x
topology: tpu7x:2x2x1
jax: 0.10.0
libtpu: 0.0.40
codegen_flags: <defaults>
</compile_context>

<pallas_src>
import functools

import jax
import jax.numpy as jnp
from jax import lax
from jax.experimental import pallas as pl
from jax.experimental.pallas import tpu as pltpu

_LANES = 128


def _l1_epe_kernel(o_ref, t_ref, l1_ref, epe_ref, l1_acc, epe_acc, *,
                   tiles_per_split, n_tiles, tail_rows, needs_mask,
                   compute_dtype):
    """Streams (C, tsub, 128) dense slabs, accumulating
         l1_acc  += sum_c |o - t|
         epe_acc += sqrt(sum_c (o - t)^2)
       and emits the per-(batch-row, split) scalar partials on the last tile."""
    s = pl.program_id(1)
    j = pl.program_id(2)
    gj = s * tiles_per_split + j          # global column-tile index in this row

    d = o_ref[0].astype(compute_dtype) - t_ref[0].astype(compute_dtype)

    def contributions(dd):
        # Channel reduction over the leading axis = elementwise adds of dense
        # (tsub, 128) slabs (VPU); sqrt goes to the EUP slot.
        l1_inc = jnp.sum(jnp.abs(dd).astype(jnp.float32), axis=0)
        epe_inc = jnp.sqrt(jnp.sum((dd * dd).astype(jnp.float32), axis=0))
        return l1_inc, epe_inc

    def accumulate(dd):
        l1_inc, epe_inc = contributions(dd)

        @pl.when(j == 0)
        def _():                          # fold init into the first step
            l1_acc[...] = l1_inc
            epe_acc[...] = epe_inc

        @pl.when(j != 0)
        def _():
            l1_acc[...] = l1_acc[...] + l1_inc
            epe_acc[...] = epe_acc[...] + epe_inc

    if needs_mask:
        # Only the globally-last column tile has a partial row range; keep the
        # iota/where off every other grid step (perf-review item #1).
        @pl.when(gj != n_tiles - 1)
        def _():
            accumulate(d)

        @pl.when(gj == n_tiles - 1)
        def _():
            row = lax.broadcasted_iota(jnp.int32, d.shape, dimension=1)
            # Mask BEFORE abs/square so OOB garbage (NaN/Inf) cannot leak.
            accumulate(jnp.where(row < tail_rows, d, jnp.zeros_like(d)))
    else:
        accumulate(d)

    @pl.when(j == tiles_per_split - 1)
    def _():
        l1_ref[...] = jnp.sum(l1_acc[...]).reshape(1, 1, 1, 1)
        epe_ref[...] = jnp.sum(epe_acc[...]).reshape(1, 1, 1, 1)


def _pick_tsub(m_rows, cap, want_even_tiles):
    """Pick the sublane-tile size: a multiple of 8 (or the full extent),
    preferring (a) a divisor of m_rows so the tail mask vanishes and
    (b) an even tile count when a 2-way column split is wanted (odd N)."""
    cap = max(8, min(cap, m_rows))
    if cap >= m_rows:
        if want_even_tiles and m_rows >= 16 and m_rows % 16 == 0:
            return m_rows // 2            # 2 clean tiles -> both cores busy
        return m_rows
    cap = (cap // 8) * 8
    lo = max(8, cap // 2)
    for t in range(cap, lo - 1, -8):      # divisor AND even tile count
        if m_rows % t == 0 and (not want_even_tiles or (m_rows // t) % 2 == 0):
            return t
    for t in range(cap, lo - 1, -8):      # any divisor (no tail mask)
        if m_rows % t == 0:
            return t
    return cap                            # masked last tile


def l1_epe_loss(output, target, block_rows=4096, low_precision=False):
    """Returns [L1, EPE] matching the torch module:
       L1  = mean(|output - target|) over all elements
       EPE = mean over (N,H,W) of ||output - target||_2 along C
    """
    assert output.shape == target.shape
    N, C, H, W = output.shape
    HW = H * W
    n_pix = N * H * W
    n_elem = n_pix * C

    # Free reshapes only (no transpose): (N, C, H, W) -> (N, C, HW)
    o3 = output.reshape(N, C, HW)
    t3 = target.reshape(N, C, HW)

    pad_cols = (-HW) % _LANES
    if pad_cols:
        # TODO(synk): rare non-lane-aligned fallback; jnp.pad costs one extra
        # HBM pass.  Zero padding contributes 0 to both sums.
        o3 = jnp.pad(o3, ((0, 0), (0, 0), (0, pad_cols)))
        t3 = jnp.pad(t3, ((0, 0), (0, 0), (0, pad_cols)))
    M = (HW + pad_cols) // _LANES

    o4 = o3.reshape(N, C, M, _LANES)
    t4 = t3.reshape(N, C, M, _LANES)

    itemsize = jnp.dtype(output.dtype).itemsize

    # Tile sizing: 2 inputs x 2 pipeline buffers x (C, tsub, 128) in the wire
    # dtype plus 2 f32 (tsub, 128) scratch accumulators.  ~26 MiB data budget
    # (2-4 MiB input blocks ~ 90% of HBM roofline on v6e/v7x); the scoped-VMEM
    # limit is raised explicitly below so v5e's 16 MiB default doesn't bind,
    # and the total stays well under v7x's 64 MiB physical VMEM.
    budget = 26 * 1024 * 1024
    per_row_bytes = _LANES * (2 * 2 * C * itemsize + 2 * 4)
    cap = min(block_rows, max(8, budget // per_row_bytes))

    # Keep both v7x TensorCores busy even when the batch axis can't split.
    want_even_tiles = (N % 2 != 0)
    tsub = _pick_tsub(M, cap, want_even_tiles)

    n_tiles = (M + tsub - 1) // tsub
    needs_mask = (M % tsub) != 0
    tail_rows = M - (n_tiles - 1) * tsub

    n_split = 2 if (want_even_tiles and n_tiles % 2 == 0) else 1
    tiles_per_split = n_tiles // n_split

    compute_dtype = jnp.float32
    if low_precision and output.dtype in (jnp.bfloat16, jnp.float16):
        compute_dtype = output.dtype      # bf16 VPU math on v6e/v7x

    kernel = functools.partial(
        _l1_epe_kernel,
        tiles_per_split=tiles_per_split, n_tiles=n_tiles,
        tail_rows=tail_rows, needs_mask=needs_mask,
        compute_dtype=compute_dtype)

    block_bytes = C * tsub * _LANES * itemsize
    vmem_used = 2 * 2 * block_bytes + 2 * tsub * _LANES * 4
    vmem_limit = int(max(vmem_used + (4 << 20), 16 << 20))

    in_map = lambda n, s, j: (n, 0, s * tiles_per_split + j, 0)
    out_map = lambda n, s, j: (n, s, 0, 0)

    l1_part, epe_part = pl.pallas_call(
        kernel,
        out_shape=(
            jax.ShapeDtypeStruct((N, n_split, 1, 1), jnp.float32),
            jax.ShapeDtypeStruct((N, n_split, 1, 1), jnp.float32),
        ),
        grid_spec=pltpu.PrefetchScalarGridSpec(
            num_scalar_prefetch=0,
            grid=(N, n_split, tiles_per_split),
            in_specs=[
                pl.BlockSpec((1, C, tsub, _LANES), in_map),
                pl.BlockSpec((1, C, tsub, _LANES), in_map),
            ],
            out_specs=(
                pl.BlockSpec((1, 1, 1, 1), out_map),
                pl.BlockSpec((1, 1, 1, 1), out_map),
            ),
            scratch_shapes=[
                pltpu.VMEM((tsub, _LANES), jnp.float32),
                pltpu.VMEM((tsub, _LANES), jnp.float32),
            ],
        ),
        compiler_params=pltpu.CompilerParams(
            dimension_semantics=("parallel", "parallel", "arbitrary"),
            vmem_limit_bytes=vmem_limit,
        ),
        cost_estimate=pl.CostEstimate(
            flops=7 * n_elem,
            transcendentals=n_pix,
            bytes_accessed=2 * n_elem * itemsize + 8 * N * n_split,
        ),
    )(o4, t4)

    l1 = (jnp.sum(l1_part) / jnp.float32(n_elem)).astype(output.dtype)
    epe = (jnp.sum(epe_part) / jnp.float32(n_pix)).astype(output.dtype)
    return [l1, epe]


if __name__ == "__main__":
    key = jax.random.PRNGKey(0)
    k1, k2 = jax.random.split(key)
    # flow-like tensors: batch=2, channels=2 (u,v), spatial=16x16
    output = jax.random.normal(k1, (2, 2, 16, 16), dtype=jnp.float32)
    target = jax.random.normal(k2, (2, 2, 16, 16), dtype=jnp.float32)

    l1_val, epe_val = l1_epe_loss(output, target)
    jax.block_until_ready(l1_val)
    jax.block_until_ready(epe_val)

    # pure-JAX reference check
    d = output - target
    l1_ref = jnp.mean(jnp.abs(d))
    epe_ref = jnp.mean(jnp.sqrt(jnp.sum(d * d, axis=1)))
    assert jnp.allclose(l1_val, l1_ref, rtol=1e-5, atol=1e-6)
    assert jnp.allclose(epe_val, epe_ref, rtol=1e-5, atol=1e-6)

    print("KERNEL_OK")
</pallas_src>

<mosaic_0001>
module attributes {stable_mosaic.version = 11 : i64} {
  func.func @_l1_epe_kernel(%arg0: i32, %arg1: i32, %arg2: i32, %arg3: memref<1x2x2x128xf32, #tpu.memory_space<vmem>>, %arg4: memref<1x2x2x128xf32, #tpu.memory_space<vmem>>, %arg5: memref<1x1x1x1xf32, #tpu.memory_space<vmem>>, %arg6: memref<1x1x1x1xf32, #tpu.memory_space<vmem>>, %arg7: memref<2x128xf32, #tpu.memory_space<vmem>>, %arg8: memref<2x128xf32, #tpu.memory_space<vmem>>) attributes {dimension_semantics = [#tpu.dimension_semantics<parallel>, #tpu.dimension_semantics<parallel>, #tpu.dimension_semantics<arbitrary>], iteration_bounds = array<i64: 2, 1, 1>, scalar_prefetch = 0 : i64, scratch_operands = 2 : i64, tpu.core_type = #tpu.core_type<tc>, window_params = [{transform_indices = @transform_0, window_bounds = array<i64: 1, 2, 2, 128>}, {transform_indices = @transform_1, window_bounds = array<i64: 1, 2, 2, 128>}, {transform_indices = @transform_2, window_bounds = array<i64: 1, 1, 1, 1>}, {transform_indices = @transform_3, window_bounds = array<i64: 1, 1, 1, 1>}]} {
    %c0 = arith.constant 0 : index
    %c0_0 = arith.constant 0 : index
    %c0_1 = arith.constant 0 : index
    %c0_2 = arith.constant 0 : index
    %0 = vector.load %arg3[%c0, %c0_0, %c0_1, %c0_2] : memref<1x2x2x128xf32, #tpu.memory_space<vmem>>, vector<1x2x2x128xf32>
    %1 = vector.shape_cast %0 : vector<1x2x2x128xf32> to vector<2x2x128xf32>
    %c0_3 = arith.constant 0 : index
    %c0_4 = arith.constant 0 : index
    %c0_5 = arith.constant 0 : index
    %c0_6 = arith.constant 0 : index
    %2 = vector.load %arg4[%c0_3, %c0_4, %c0_5, %c0_6] : memref<1x2x2x128xf32, #tpu.memory_space<vmem>>, vector<1x2x2x128xf32>
    %3 = vector.shape_cast %2 : vector<1x2x2x128xf32> to vector<2x2x128xf32>
    %4 = arith.subf %1, %3 : vector<2x2x128xf32>
    %5 = math.absf %4 : vector<2x2x128xf32>
    %cst = arith.constant dense<0.000000e+00> : vector<2x128xf32>
    %6 = vector.multi_reduction <add>, %5, %cst [0] : vector<2x2x128xf32> to vector<2x128xf32>
    %7 = arith.mulf %4, %4 : vector<2x2x128xf32>
    %cst_7 = arith.constant dense<0.000000e+00> : vector<2x128xf32>
    %8 = vector.multi_reduction <add>, %7, %cst_7 [0] : vector<2x2x128xf32> to vector<2x128xf32>
    %9 = math.sqrt %8 : vector<2x128xf32>
    %c0_i32 = arith.constant 0 : i32
    %10 = arith.cmpi eq, %arg2, %c0_i32 : i32
    %11 = arith.extui %10 : i1 to i32
    %c0_i32_8 = arith.constant 0 : i32
    %12 = arith.cmpi ne, %11, %c0_i32_8 : i32
    scf.if %12 {
      %c0_13 = arith.constant 0 : index
      %c0_14 = arith.constant 0 : index
      %19 = vector.load %arg7[%c0_13, %c0_14] : memref<2x128xf32, #tpu.memory_space<vmem>>, vector<2x128xf32>
      tpu.vector_store %arg7[%c0_13, %c0_14], %6 {strides = array<i32>} : memref<2x128xf32, #tpu.memory_space<vmem>>, vector<2x128xf32>,
      %c0_15 = arith.constant 0 : index
      %c0_16 = arith.constant 0 : index
      %20 = vector.load %arg8[%c0_15, %c0_16] : memref<2x128xf32, #tpu.memory_space<vmem>>, vector<2x128xf32>
      tpu.vector_store %arg8[%c0_15, %c0_16], %9 {strides = array<i32>} : memref<2x128xf32, #tpu.memory_space<vmem>>, vector<2x128xf32>,
    } else {
    }
    %c0_i32_9 = arith.constant 0 : i32
    %13 = arith.cmpi ne, %arg2, %c0_i32_9 : i32
    %14 = arith.extui %13 : i1 to i32
    %c0_i32_10 = arith.constant 0 : i32
    %15 = arith.cmpi ne, %14, %c0_i32_10 : i32
    scf.if %15 {
      %c0_13 = arith.constant 0 : index
      %c0_14 = arith.constant 0 : index
      %19 = vector.load %arg7[%c0_13, %c0_14] : memref<2x128xf32, #tpu.memory_space<vmem>>, vector<2x128xf32>
      %20 = arith.addf %19, %6 : vector<2x128xf32>
      %c0_15 = arith.constant 0 : index
      %c0_16 = arith.constant 0 : index
      %21 = vector.load %arg7[%c0_15, %c0_16] : memref<2x128xf32, #tpu.memory_space<vmem>>, vector<2x128xf32>
      tpu.vector_store %arg7[%c0_15, %c0_16], %20 {strides = array<i32>} : memref<2x128xf32, #tpu.memory_space<vmem>>, vector<2x128xf32>,
      %c0_17 = arith.constant 0 : index
      %c0_18 = arith.constant 0 : index
      %22 = vector.load %arg8[%c0_17, %c0_18] : memref<2x128xf32, #tpu.memory_space<vmem>>, vector<2x128xf32>
      %23 = arith.addf %22, %9 : vector<2x128xf32>
      %c0_19 = arith.constant 0 : index
      %c0_20 = arith.constant 0 : index
      %24 = vector.load %arg8[%c0_19, %c0_20] : memref<2x128xf32, #tpu.memory_space<vmem>>, vector<2x128xf32>
      tpu.vector_store %arg8[%c0_19, %c0_20], %23 {strides = array<i32>} : memref<2x128xf32, #tpu.memory_space<vmem>>, vector<2x128xf32>,
    } else {
    }
    %c0_i32_11 = arith.constant 0 : i32
    %16 = arith.cmpi eq, %arg2, %c0_i32_11 : i32
    %17 = arith.extui %16 : i1 to i32
    %c0_i32_12 = arith.constant 0 : i32
    %18 = arith.cmpi ne, %17, %c0_i32_12 : i32
    scf.if %18 {
      %c0_13 = arith.constant 0 : index
      %c0_14 = arith.constant 0 : index
      %19 = vector.load %arg7[%c0_13, %c0_14] : memref<2x128xf32, #tpu.memory_space<vmem>>, vector<2x128xf32>
      %20 = vector.shape_cast %19 : vector<2x128xf32> to vector<1x2x128xf32>
      %cst_15 = arith.constant dense<0.000000e+00> : vector<1xf32>
      %21 = vector.multi_reduction <add>, %20, %cst_15 [1, 2] : vector<1x2x128xf32> to vector<1xf32>
      %22 = vector.shape_cast %21 : vector<1xf32> to vector<1x1x1xf32>
      %23 = vector.extract %22[0, 0, 0] : f32 from vector<1x1x1xf32>
      %24 = vector.broadcast %23 : f32 to vector<1x1x1x1xf32>
      %c0_16 = arith.constant 0 : index
      %c0_17 = arith.constant 0 : index
      %c0_18 = arith.constant 0 : index
      %c0_19 = arith.constant 0 : index
      %25 = vector.load %arg5[%c0_16, %c0_17, %c0_18, %c0_19] : memref<1x1x1x1xf32, #tpu.memory_space<vmem>>, vector<1x1x1x1xf32>
      tpu.vector_store %arg5[%c0_16, %c0_17, %c0_18, %c0_19], %24 {strides = array<i32>} : memref<1x1x1x1xf32, #tpu.memory_space<vmem>>, vector<1x1x1x1xf32>,
      %c0_20 = arith.constant 0 : index
      %c0_21 = arith.constant 0 : index
      %26 = vector.load %arg8[%c0_20, %c0_21] : memref<2x128xf32, #tpu.memory_space<vmem>>, vector<2x128xf32>
      %27 = vector.shape_cast %26 : vector<2x128xf32> to vector<1x2x128xf32>
      %cst_22 = arith.constant dense<0.000000e+00> : vector<1xf32>
      %28 = vector.multi_reduction <add>, %27, %cst_22 [1, 2] : vector<1x2x128xf32> to vector<1xf32>
      %29 = vector.shape_cast %28 : vector<1xf32> to vector<1x1x1xf32>
      %30 = vector.extract %29[0, 0, 0] : f32 from vector<1x1x1xf32>
      %31 = vector.broadcast %30 : f32 to vector<1x1x1x1xf32>
      %c0_23 = arith.constant 0 : index
      %c0_24 = arith.constant 0 : index
      %c0_25 = arith.constant 0 : index
      %c0_26 = arith.constant 0 : index
      %32 = vector.load %arg6[%c0_23, %c0_24, %c0_25, %c0_26] : memref<1x1x1x1xf32, #tpu.memory_space<vmem>>, vector<1x1x1x1xf32>
      tpu.vector_store %arg6[%c0_23, %c0_24, %c0_25, %c0_26], %31 {strides = array<i32>} : memref<1x1x1x1xf32, #tpu.memory_space<vmem>>, vector<1x1x1x1xf32>,
    } else {
    }
    return
  }
  func.func @transform_0(%arg0: i32, %arg1: i32, %arg2: i32) -> (i32, i32, i32, i32) {
    %c1_i32 = arith.constant 1 : i32
    %0 = arith.muli %arg1, %c1_i32 : i32
    %1 = arith.addi %0, %arg2 : i32
    %c0_i32 = arith.constant 0 : i32
    %c0_i32_0 = arith.constant 0 : i32
    %c0_i32_1 = arith.constant 0 : i32
    return %arg0, %c0_i32, %1, %c0_i32_0 : i32, i32, i32, i32
  }
  func.func @transform_1(%arg0: i32, %arg1: i32, %arg2: i32) -> (i32, i32, i32, i32) {
    %c1_i32 = arith.constant 1 : i32
    %0 = arith.muli %arg1, %c1_i32 : i32
    %1 = arith.addi %0, %arg2 : i32
    %c0_i32 = arith.constant 0 : i32
    %c0_i32_0 = arith.constant 0 : i32
    %c0_i32_1 = arith.constant 0 : i32
    return %arg0, %c0_i32, %1, %c0_i32_0 : i32, i32, i32, i32
  }
  func.func @transform_2(%arg0: i32, %arg1: i32, %arg2: i32) -> (i32, i32, i32, i32) {
    %c0_i32 = arith.constant 0 : i32
    %c0_i32_0 = arith.constant 0 : i32
    %c0_i32_1 = arith.constant 0 : i32
    return %arg0, %arg1, %c0_i32, %c0_i32_0 : i32, i32, i32, i32
  }
  func.func @transform_3(%arg0: i32, %arg1: i32, %arg2: i32) -> (i32, i32, i32, i32) {
    %c0_i32 = arith.constant 0 : i32
    %c0_i32_0 = arith.constant 0 : i32
    %c0_i32_1 = arith.constant 0 : i32
    return %arg0, %arg1, %c0_i32, %c0_i32_0 : i32, i32, i32, i32
  }
}

</mosaic_0001>

<bundles_post_ra>
// kernel: tpu_custom_call.1
= control target key start
LH: loop header
LB: loop body
LE: loop exit
PB: predicated region body
PF: predicated region fallthrough
CT: control target
= control target key end

     0   :  { %9 = vsyncpa [#allocation5], 0  ;;  %s917_s0 = inlined_call_operand.hbm [shape: f32[2,2,2,128], index: 0, kind: input, shape index: {}]   ;;  %s918_s1 = inlined_call_operand.hbm [shape: f32[2,2,2,128], index: 1, kind: input, shape index: {}]   ;;  %s919_s2 = inlined_call_operand.vmem [shape: f32[2,1,1,1], index: 2, kind: output, shape index: {0}]   ;;  %s920_s3 = inlined_call_operand.vmem [shape: f32[2,1,1,1], index: 3, kind: output, shape index: {1}]  }
   0x1   :  { %11 = vsyncpa [#allocation5 + $0x1], 0 }
   0x2   :  { %12 = vsyncpa [#allocation7], 0 }
   0x3   :  { %14 = vsyncpa [#allocation7 + $0x1], 0  ;;  %s724_s12 = smov 0   ;;  %s726_s13 = smov 0  }
   0x4   :  { %s728_s14 = smov 0   ;;  %s730_s15 = smov 0  }
   0x5   :  { %s732_s16 = smov 0   ;;  %s734_s17 = smov 0  }
   0x6 LB: > { %s499_s18 = sadd.s32 4294967295, %s698_s17   ;;  %s39_s19 = sadd.s32 1, %s694_s16  ;;  %s698_s17 = sphi %s734_s17, %s20_s17   ;;  %s694_s16 = sphi %s732_s16, %s931_s16   ;;  %s690_s15 = sphi %s730_s15, %s930_s15   ;;  %s686_s14 = sphi %s728_s14, %s929_s14   ;;  %s682_s13 = sphi %s726_s13, %s928_s13   ;;  %s678_s12 = sphi %s724_s12, %s927_s12  }
   0x7   : > { %p41_p0 = scmp.ge.s32.totalorder %s39_s19, 2  ;;  %s50_s20 = sadd.s32 1, %s686_s14 }
   0x8   : > { %p57_p1 = scmp.ne.s32.totalorder %s686_s14, %s682_s13  ;;  %p58_p2 = scmp.eq.s32.totalorder %s698_s17, 0 }
   0x9   : > { %s933_s19 = smov (%p41_p0, %s39_s19), 0  ;;  %p63_p4 = scmp.ne.s32.totalorder %s682_s13, %s678_s12 }
   0xa   : > { %p760_p3 = por %p58_p2, %p57_p1  ;;  %s45_s22 = ssub.s32 %s694_s16, %s933_s19 }
   0xb   : > { %p64_p5 = scmp.eq.s32.totalorder %s499_s18, 0  ;;  %p48_p6 = scmp.eq.s32.totalorder %s45_s22, 0 }
   0xc   : > { %p531_p8 = scmp.lt.s32.totalorder %s698_s17, 2  ;;  %s776_s25 = sand.u32 1, %s686_s14  }
   0xd   : > { %p767_p7 = por %p64_p5, %p63_p4  ;;  %s514_s26 = sshll.u32 %s694_s16, 6 }
   0xe   : > { %s773_s24 = scalar_select %p48_p6, %s686_s14, %s50_s20  }
   0xf   : > { %s923_s23 = scalar_select %p767_p7, 1, 0 }
  0x10   : > { %s503_s27 = sshll.u32 %s776_s25, 2  ;;  %s785_s30 = scalar_lea.hbm %s917_s0, %s514_s26 }
  0x11   : > { %s177_s4 = scalar_lea.vmem [#allocation4], %s503_s27  ;;  %p791_p9 = pnand %p531_p8, %p760_p3 }
  0x12   : > { %s186_s5 = sshll.u32 %s177_s4, 4  ;;  %s174_s7 = scalar_lea.sflag [#allocation5], %s776_s25  ;;  %s795_s5 = int_to_ptr.vmem [resolvable:$true] %s186_s5 }
  0x13   : > { %s584_s8 = scalar_lea.hbm %s785_s30, 64  ;;  %p586_p11 = pneg %p791_p9 }
  0x14   : > { %p585_p10 = scmp.ne.s32.totalorder %s785_s30, %s584_s8  ;;  %s589_s11 = scalar_lea.hbm %s917_s0, 128 }
  0x15   : > { %p590_p0 = scmp.lt.u32.totalorder %s785_s30, %s917_s0  ;;  %p591_p1 = scmp.lt.u32.totalorder %s589_s11, %s584_s8 }
  0x16   : > { %p587_p12 = pnand %p586_p11, %p585_p10  ;;  %p593_p3 = scmp.lt.u32.totalorder %s584_s8, %s785_s30 }
  0x17   : > { %p592_p2 = por %p591_p1, %p590_p0 }
  0x18   : > { %p588_p13 = pneg %p587_p12 }
  0x19   : > { %p594_p4 = por %p593_p3, %p592_p2 }
  0x1b   : > { %p595_p5 = pnand %p594_p4, %p588_p13 }
  0x1d   : > { %598 = shalt.err (!%p595_p5)
}
  0x1e   : > { %s599_s20 = scalar_lea.vmem %s795_s5, 64  ;;  %s700_s21 = smov [#allocation4]  }
  0x1f   : > { %p600_p6 = scmp.ne.s32.totalorder %s795_s5, %s599_s20  ;;  %s604_s22 = sshll.u32 %s700_s21, 4  ;;  %s605_s22 = int_to_ptr.vmem [resolvable:$false] %s604_s22 }
  0x20   : > { %s606_s28 = scalar_lea.vmem %s605_s22, 128  ;;  %p607_p12 = scmp.lt.s32.totalorder %s795_s5, %s605_s22 }
  0x21   : > { %p602_p8 = pnand %p600_p6, %p586_p11  ;;  %p608_p0 = scmp.lt.s32.totalorder %s606_s28, %s599_s20 }
  0x23   : > { %p603_p10 = pneg %p602_p8  ;;  %p609_p1 = por %p608_p0, %p607_p12 }
  0x25   : > { %p610_p2 = pnand %p609_p1, %p603_p10 }
  0x27   : > { %613 = shalt.err (!%p610_p2)
}
  0x28   : > { %s701_s29 = smov 32   ;;  %s702_s4 = smov 2  }
  0x29   : > { %527 = dma.hbm_to_vmem [thread:$0]  (!%p791_p9), %s785_s30, 64, %s795_s5, %s174_s7, %s701_s29, %s701_s29, %s702_s4  }
  0x2a   : > { %p509_p13 = scmp.ge.s32.totalorder %s698_s17, 1  ;;  %p217_p3 = scmp.lt.s32.totalorder %s698_s17, 3 }
  0x2b   : > { %s839_s11 = scalar_lea.hbm %s918_s1, %s514_s26  ;;  %s200_s12 = scalar_lea.vmem [#allocation6], %s503_s27 }
  0x2c   : > { %p830_p4 = pnand %p509_p13, %p217_p3  ;;  %s209_s18 = sshll.u32 %s200_s12, 4  ;;  %s843_s18 = int_to_ptr.vmem [resolvable:$true] %s209_s18 }
  0x2d   : > { %s197_s30 = scalar_lea.sflag [#allocation7], %s776_s25  ;;  %s614_s5 = scalar_lea.hbm %s839_s11, 64 }
  0x2e   : > { %p615_p5 = scmp.ne.s32.totalorder %s839_s11, %s614_s5  ;;  %s619_s26 = scalar_lea.hbm %s918_s1, 128 }
  0x2f   : > { %p620_p10 = scmp.lt.u32.totalorder %s839_s11, %s918_s1  ;;  %p621_p12 = scmp.lt.u32.totalorder %s619_s26, %s614_s5 }
  0x30   : > { %p617_p6 = pnand %p615_p5, %p586_p11  ;;  %p623_p1 = scmp.lt.u32.totalorder %s614_s5, %s839_s11 }
  0x31   : > { %p622_p0 = por %p621_p12, %p620_p10 }
  0x32   : > { %p618_p8 = pneg %p617_p6 }
  0x33   : > { %p624_p2 = por %p623_p1, %p622_p0 }
  0x35   : > { %p625_p13 = pnand %p624_p2, %p618_p8 }
  0x37   : > { %628 = shalt.err (!%p625_p13)
}
  0x38   : > { %s629_s27 = scalar_lea.vmem %s843_s18, 64  ;;  %s703_s28 = smov [#allocation6]  }
  0x39   : > { %p630_p3 = scmp.ne.s32.totalorder %s843_s18, %s629_s27  ;;  %s634_s9 = sshll.u32 %s703_s28, 4  ;;  %s635_s9 = int_to_ptr.vmem [resolvable:$false] %s634_s9 }
  0x3a   : > { %s636_s10 = scalar_lea.vmem %s635_s9, 128  ;;  %p637_p7 = scmp.lt.s32.totalorder %s843_s18, %s635_s9 }
  0x3b   : > { %p632_p5 = pnand %p630_p3, %p586_p11  ;;  %p638_p10 = scmp.lt.s32.totalorder %s636_s10, %s629_s27 }
  0x3d   : > { %p633_p6 = pneg %p632_p5  ;;  %p639_p12 = por %p638_p10, %p637_p7 }
  0x3f   : > { %p640_p0 = pnand %p639_p12, %p633_p6 }
  0x41   : > { %643 = shalt.err (!%p640_p0)
}
  0x42   : > { %530 = dma.hbm_to_vmem [thread:$0]  (!%p791_p9), %s839_s11, 64, %s843_s18, %s197_s30, %s701_s29, %s701_s29, %s702_s4  }
  0x43   : > { %221 = sbr.rel (%p830_p4) target bundleno = 316 (0x13c), region = 28  ;;  %s223_s12 = sand.u32 (!%p830_p4), 1, %s682_s13  }
  0x44   : > { %s510_s5 = sshll.u32 (!%p830_p4), %s223_s12, 2  ;;  %s224_s7 = scalar_lea.sflag (!%p830_p4), [#allocation5], %s223_s12 }
  0x45   : > { %s227_s20 = scalar_lea.vmem (!%p830_p4), [#allocation4], %s510_s5  ;;  %p926_p7 = scmp.ne.s32.totalorder (!%p830_p4), %s923_s23, 0 }
  0x4a   : > { %669 = dma.done.wait (%p926_p7), %s224_s7, 64  }
  0x4b   : > { %671 = vsyncadd (%p926_p7), %s224_s7, 4294967232  ;;  %s233_s6 = scalar_lea.sflag [#allocation7], %s223_s12  ;;  %s236_s25 = scalar_lea.vmem [#allocation6], %s510_s5 }
  0x4c   : > { %673 = dma.done.wait (%p926_p7), %s233_s6, 64  }
  0x4d   : > { %675 = vsyncadd (%p926_p7), %s233_s6, 4294967232  ;;  %v285_v0 = vld [vmem:[%s227_s20] sm:$0x3]  ;;  %v286_v1 = vld [vmem:[%s227_s20 + $0x2] sm:$0x3]  ;;  %vm293_vm0 = vcmask 1041408  }
  0x4e   : > { %v287_v2 = vld [vmem:[%s236_s25] sm:$0x3]  ;;  %v288_v3 = vld [vmem:[%s236_s25 + $0x2] sm:$0x3]  ;;  %p273_p9 = scmp.lt.s32.totalorder %s690_s15, 1  ;;  %vm340_vm3 = vcmask 0  }
  0x4f   : > { %v289_v4 = vsub.f32 %v285_v0, %v287_v2  ;;  %v290_v5 = vsub.f32 %v286_v1, %v288_v3 }
  0x50   : > { %s935_s15 = smov (!%p273_p9, %s690_s15), 1 }
  0x51   : > { %v291_v6 = vand.u32 2147483647, %v289_v4  ;;  %v297_v7 = vmul.f32 %v289_v4, %v289_v4  ;;  %v292_v8 = vand.u32 2147483647, %v290_v5  ;;  %v298_v9 = vmul.f32 %v290_v5, %v290_v5  ;;  %s278_s4 = scalar_lea.vmem %s919_s2, %s935_s15  ;;  %s284_s30 = scalar_lea.vmem %s920_s3, %s935_s15 }
  0x53   : > { %v294_v10 = vsel %vm293_vm0, %v291_v6, 0.0  ;;  %v299_v11 = vsel %vm293_vm0, %v297_v7, 0.0  ;;  %v295_v12 = vsel %vm293_vm0, %v292_v8, 0.0  ;;  %v300_v13 = vsel %vm293_vm0, %v298_v9, 0.0 }
  0x54   : > { %v296_v14 = vadd.f32 %v295_v12, %v294_v10  ;;  %v301_v15 = vadd.f32 %v300_v13, %v299_v11 }
  0x56   : > { %582 = vrsqrt.f32 %v301_v15  ;;  %313 = vst [vmem:[#allocation2] sm:$0x3] %v296_v14  ;;  %vm304_vm1 = vcmp.eq.f32.partialorder %v301_v15, inf  ;;  %v307_v19 = vand.u32 2147483648, %v301_v15  ;;  %vm306_vm2 = vcmp.eq.f32.partialorder %v301_v15, 0.0 }
  0x5d   : > { %v328_v16 = vld [vmem:[#allocation2] sm:$0x3] }
  0x5e   : > { %v329_v17 = vsel %vm293_vm0, %v328_v16, 0.0 }
  0x5f   : > { %330 = vadd.xlane.f32.xlu0 %v329_v17 }
  0x60   : > { %v583_v18 = vpop.eup %582 }
  0x61   : > { %v303_v20 = vmul.f32 %v583_v18, %v301_v15 }
  0x63   : > { %v305_v21 = vsel %vm304_vm1, %v301_v15, %v303_v20 }
  0x64   : > { %v308_v22 = vsel %vm306_vm2, %v307_v19, %v305_v21 }
  0x65   : > { %314 = vst [vmem:[#allocation3] sm:$0x3] %v308_v22 }
  0x6c   : > { %v342_v23 = vld [vmem:[#allocation3] sm:$0x3] }
  0x6d   : > { %v343_v24 = vsel %vm293_vm0, %v342_v23, 0.0 }
  0x6e   : > { %344 = vadd.xlane.f32.xlu0 %v343_v24 }
  0xec   : > { %v331_v25 = vpop.xlane.xlu0 %330 }
  0xed   : > { %v332_v26 = vrot.slane %v331_v25, 4 }
  0xef   : > { %v333_v27 = vadd.f32 %v332_v26, %v331_v25 }
  0xf1   : > { %v334_v28 = vrot.slane %v333_v27, 2 }
  0xf3   : > { %v335_v29 = vadd.f32 %v334_v28, %v333_v27 }
  0xf5   : > { %v336_v30 = vrot.slane %v335_v29, 1 }
  0xf7   : > { %v337_v31 = vadd.f32 %v336_v30, %v335_v29 }
  0xf9   : > { %516 = vpush %v337_v31 }
  0xfb   : > { %v345_v32 = vpop.xlane.xlu0 %344 }
  0xfc   : > { %v346_v33 = vrot.slane %v345_v32, 4 }
  0xfe   : > { %v347_v34 = vadd.f32 %v346_v33, %v345_v32 }
 0x100   : > { %v348_v35 = vrot.slane %v347_v34, 2 }
 0x102   : > { %v349_v36 = vadd.f32 %v348_v35, %v347_v34 }
 0x104   : > { %v350_v37 = vrot.slane %v349_v36, 1 }
 0x106   : > { %v351_v38 = vadd.f32 %v350_v37, %v349_v36 }
 0x108   : > { %518 = vpush %v351_v38 }
 0x12a   : > { %s517_s8 = spop %516 }
 0x12b   : > { %v339_v39 = vstv %s517_s8 }
 0x12c   : > { %341 = vst.msk [vmem:[%s278_s4] sm:$0x1] %vm340_vm3, %v339_v39 }
 0x139   : > { %s519_s26 = spop %518 }
 0x13a   : > { %v353_v40 = vstv %s519_s26 }
 0x13b   : > { %354 = vst.msk [vmem:[%s284_s30] sm:$0x1] %vm340_vm3, %v353_v40 }
 0x13c PF: > { %s20_s17 = sadd.s32 1, %s698_s17   ;;  %s927_s12 = smov %s682_s13 }
 0x13d   : > { %p17_p11 = scmp.ge.s32.totalorder %s20_s17, 4   ;;  %s928_s13 = smov %s686_s14 }
 0x13e   : > { %s929_s14 = smov %s773_s24  ;;  %s930_s15 = smov %s694_s16 }
 0x13f   : > { %s931_s16 = smov %s933_s19  ;;  %19 = sbr.rel (!%p17_p11) target bundleno = 6 (0x6), region = 105 }
 0x146   :  { %396 = vsyncpa [#allocation5], 1 }
 0x147   :  { %398 = vsyncpa [#allocation5 + $0x1], 1 }
 0x148   :  { %399 = vsyncpa [#allocation7], 1 }
 0x149   :  { %401 = vsyncpa [#allocation7 + $0x1], 1 }

</bundles_post_ra>
